<compile_context>
chip_gen: v6e
topology: v6e:2x2x1
jax: 0.10.0
libtpu: 0.0.40
codegen_flags: <defaults>
</compile_context>

<pallas_src>
import functools

import jax
import jax.numpy as jnp
from jax.experimental import pallas as pl
from jax.experimental.pallas import tpu as pltpu


def _mlp_kernel(u_ref, m_ref, w1a_ref, w1b_ref, b1_ref, w2_ref, b2_ref,
                w3_ref, b3_ref, o_ref):
    """One edge-tile (edges on lanes) of the EdgeDecoder MLP.

    u_ref  : (H,  TE) bf16   user embeddings for this edge tile
    m_ref  : (H,  TE) bf16   movie embeddings for this edge tile
    w1a    : (4H, H ) bf16   first-layer weight, user half   (W1[:, :H])
    w1b    : (4H, H ) bf16   first-layer weight, movie half  (W1[:, H:])
    b1     : (4H, 1 ) f32
    w2     : (2H, 4H) bf16
    b2     : (2H, 1 ) f32
    w3     : (2H, 1 ) f32    final layer weight (used on VPU, not MXU)
    b3     : (1, 1)   f32    (SMEM scalar)
    o_ref  : (1,  TE) f32    lane-dense output slab
    """
    # Layer 1: concat fused away by splitting W1.  f32 accumulation on MXU.
    h1 = jnp.dot(w1a_ref[...], u_ref[...], preferred_element_type=jnp.float32)
    h1 = h1 + jnp.dot(w1b_ref[...], m_ref[...], preferred_element_type=jnp.float32)
    h1 = jnp.maximum(h1 + b1_ref[...], 0.0)                     # (4H, TE) f32
    # TODO(synk): nn.Dropout(0.2) is identity in eval mode; training-mode
    # dropout (pltpu.prng_random_bits mask) intentionally not applied here.

    # Layer 2: bf16 operands, f32 accumulation.
    h2 = jnp.dot(w2_ref[...], h1.astype(jnp.bfloat16),
                 preferred_element_type=jnp.float32)
    h2 = jnp.maximum(h2 + b2_ref[...], 0.0)                     # (2H, TE) f32

    # Layer 3 (output dim 1): VPU multiply + sublane reduction, no N=1 matmul.
    out = jnp.sum(h2 * w3_ref[...], axis=0, keepdims=True) + b3_ref[0, 0]
    o_ref[...] = out                                            # (1, TE) f32


def edge_decoder_forward(z_user, z_movie, edge_label_index, params, *,
                         tile_e=2048):
    """EdgeDecoder.forward.

    z_user  : (Nu, H) float32
    z_movie : (Nm, H) float32
    edge_label_index : (2, E) int32
    params  : dict with w1 (4H,2H), b1 (4H,), w2 (2H,4H), b2 (2H,),
              w3 (1,2H), b3 ()  -- PyTorch nn.Linear [out, in] convention.
    returns : (E,) float32
    """
    H = z_user.shape[-1]
    E = edge_label_index.shape[1]

    # --- glue: gather + transpose to edges-on-lanes layout (plain JAX) ---
    u_t = jnp.take(z_user, edge_label_index[0], axis=0).T.astype(jnp.bfloat16)   # (H, E)
    m_t = jnp.take(z_movie, edge_label_index[1], axis=0).T.astype(jnp.bfloat16)  # (H, E)

    # Edge (lane) tile: multiple of 128; use the full tile_e for large E so the
    # grid amortizes per-step overhead; shrink only when E itself is small.
    if E >= tile_e:
        te = tile_e
    else:
        te = max(128, ((E + 127) // 128) * 128)
    E_pad = ((E + te - 1) // te) * te
    if E_pad != E:
        pad = ((0, 0), (0, E_pad - E))
        u_t = jnp.pad(u_t, pad)
        m_t = jnp.pad(m_t, pad)
    # NOTE: padded edge lanes compute relu(b1)-derived garbage; it is sliced
    # off below ([:E]).  Do not reduce over the padded output elsewhere.

    # Weight preparation (constant-folded under jit).
    w1a = params["w1"][:, :H].astype(jnp.bfloat16)        # (4H, H)
    w1b = params["w1"][:, H:].astype(jnp.bfloat16)        # (4H, H)
    b1 = params["b1"].reshape(4 * H, 1).astype(jnp.float32)
    w2 = params["w2"].astype(jnp.bfloat16)                # (2H, 4H)
    b2 = params["b2"].reshape(2 * H, 1).astype(jnp.float32)
    w3 = params["w3"].reshape(2 * H, 1).astype(jnp.float32)
    b3 = params["b3"].reshape(1, 1).astype(jnp.float32)

    grid = (E_pad // te,)
    out = pl.pallas_call(
        _mlp_kernel,
        out_shape=jax.ShapeDtypeStruct((1, E_pad), jnp.float32),
        grid_spec=pltpu.PrefetchScalarGridSpec(
            num_scalar_prefetch=0,
            grid=grid,
            in_specs=[
                pl.BlockSpec((H, te), lambda i: (0, i)),          # u_t
                pl.BlockSpec((H, te), lambda i: (0, i)),          # m_t
                pl.BlockSpec((4 * H, H), lambda i: (0, 0)),       # w1a
                pl.BlockSpec((4 * H, H), lambda i: (0, 0)),       # w1b
                pl.BlockSpec((4 * H, 1), lambda i: (0, 0)),       # b1
                pl.BlockSpec((2 * H, 4 * H), lambda i: (0, 0)),   # w2
                pl.BlockSpec((2 * H, 1), lambda i: (0, 0)),       # b2
                pl.BlockSpec((2 * H, 1), lambda i: (0, 0)),       # w3
                pl.BlockSpec(memory_space=pltpu.MemorySpace.SMEM),  # b3 scalar
            ],
            out_specs=pl.BlockSpec((1, te), lambda i: (0, i)),
        ),
        compiler_params=pltpu.CompilerParams(
            # Parallel edge axis: shards grid steps across TensorCores on v7x.
            dimension_semantics=("parallel",),
            # Explicit VMEM budget (safe on v5e/v6e/v7x); actual per-tile use
            # at te=2048, H=32 is only a few MiB.
            vmem_limit_bytes=32 * 1024 * 1024,
        ),
    )(u_t, m_t, w1a, w1b, b1, w2, b2, w3, b3)

    return out[0, :E]  # squeeze(-1)


def init_edge_decoder_params(key, hidden_channels):
    """Deterministic init matching torch.nn.Linear ([out, in] weights)."""
    H = hidden_channels
    dims = [(4 * H, 2 * H), (2 * H, 4 * H), (1, 2 * H)]
    params = {}
    for idx, (dout, din) in enumerate(dims, start=1):
        key, kw, kb = jax.random.split(key, 3)
        bound = 1.0 / jnp.sqrt(din)
        params[f"w{idx}"] = jax.random.uniform(
            kw, (dout, din), jnp.float32, -bound, bound)
        params[f"b{idx}"] = jax.random.uniform(
            kb, (dout,), jnp.float32, -bound, bound)
    params["b3"] = params["b3"].reshape(())  # scalar bias for the 1-wide layer
    return params


def _reference_forward(z_user, z_movie, edge_label_index, params):
    """Pure-JAX f32 reference (mirrors the PyTorch module)."""
    user_z = z_user[edge_label_index[0]]
    movie_z = z_movie[edge_label_index[1]]
    f = jnp.concatenate([user_z, movie_z], axis=-1)
    h1 = jnp.maximum(f @ params["w1"].T + params["b1"], 0.0)
    h2 = jnp.maximum(h1 @ params["w2"].T + params["b2"], 0.0)
    out = h2 @ params["w3"].T + params["b3"]
    return out[:, 0]


if __name__ == "__main__":
    H = 32            # hidden_channels
    NUM_USERS = 16
    NUM_MOVIES = 24
    E = 8             # number of edges to decode

    key = jax.random.PRNGKey(0)
    k_params, k_u, k_m, k_ei0, k_ei1 = jax.random.split(key, 5)

    params = init_edge_decoder_params(k_params, H)
    z_user = jax.random.normal(k_u, (NUM_USERS, H), jnp.float32)
    z_movie = jax.random.normal(k_m, (NUM_MOVIES, H), jnp.float32)
    edge_label_index = jnp.stack([
        jax.random.randint(k_ei0, (E,), 0, NUM_USERS),
        jax.random.randint(k_ei1, (E,), 0, NUM_MOVIES),
    ]).astype(jnp.int32)

    fwd = jax.jit(functools.partial(edge_decoder_forward, params=params))
    out = fwd(z_user, z_movie, edge_label_index)
    out = jax.block_until_ready(out)

    ref = _reference_forward(z_user, z_movie, edge_label_index, params)
    assert out.shape == (E,)
    # bf16 MXU operands (f32 accumulation) -> loosened tolerance vs f32 ref.
    assert jnp.allclose(out, ref, atol=5e-2, rtol=5e-2), (out, ref)

    print("KERNEL_OK")
</pallas_src>

<mosaic_0001>
module attributes {stable_mosaic.version = 11 : i64} {
  func.func @_mlp_kernel(%arg0: i32, %arg1: memref<32x128xbf16, #tpu.memory_space<vmem>>, %arg2: memref<32x128xbf16, #tpu.memory_space<vmem>>, %arg3: memref<128x32xbf16, #tpu.memory_space<vmem>>, %arg4: memref<128x32xbf16, #tpu.memory_space<vmem>>, %arg5: memref<128x1xf32, #tpu.memory_space<vmem>>, %arg6: memref<64x128xbf16, #tpu.memory_space<vmem>>, %arg7: memref<64x1xf32, #tpu.memory_space<vmem>>, %arg8: memref<64x1xf32, #tpu.memory_space<vmem>>, %arg9: memref<1x1xf32, #tpu.memory_space<smem>>, %arg10: memref<1x128xf32, #tpu.memory_space<vmem>>) attributes {dimension_semantics = [#tpu.dimension_semantics<parallel>], iteration_bounds = array<i64: 1>, scalar_prefetch = 0 : i64, scratch_operands = 0 : i64, tpu.core_type = #tpu.core_type<tc>, window_params = [{transform_indices = @transform_0, window_bounds = array<i64: 32, 128>}, {transform_indices = @transform_1, window_bounds = array<i64: 32, 128>}, {pipeline_mode = #tpu.pipeline_mode<synchronous>, transform_indices = @transform_2, window_bounds = array<i64: 128, 32>}, {pipeline_mode = #tpu.pipeline_mode<synchronous>, transform_indices = @transform_3, window_bounds = array<i64: 128, 32>}, {pipeline_mode = #tpu.pipeline_mode<synchronous>, transform_indices = @transform_4, window_bounds = array<i64: 128, 1>}, {pipeline_mode = #tpu.pipeline_mode<synchronous>, transform_indices = @transform_5, window_bounds = array<i64: 64, 128>}, {pipeline_mode = #tpu.pipeline_mode<synchronous>, transform_indices = @transform_6, window_bounds = array<i64: 64, 1>}, {pipeline_mode = #tpu.pipeline_mode<synchronous>, transform_indices = @transform_7, window_bounds = array<i64: 64, 1>}, {transform_indices = @transform_8, window_bounds = array<i64: 1, 1>}, {transform_indices = @transform_9, window_bounds = array<i64: 1, 128>}]} {
    %c0 = arith.constant 0 : index
    %c0_0 = arith.constant 0 : index
    %0 = vector.load %arg3[%c0, %c0_0] : memref<128x32xbf16, #tpu.memory_space<vmem>>, vector<128x32xbf16>
    %c0_1 = arith.constant 0 : index
    %c0_2 = arith.constant 0 : index
    %1 = vector.load %arg1[%c0_1, %c0_2] : memref<32x128xbf16, #tpu.memory_space<vmem>>, vector<32x128xbf16>
    %cst = arith.constant dense<0.000000e+00> : vector<128x128xf32>
    %2 = tpu.matmul %0, %1, %cst {dimension_numbers = #tpu.dot_dimension_numbers<[1], [0], [0], [1], [0, 0, 1, 1], [], []>} : vector<128x32xbf16>, vector<32x128xbf16>, vector<128x128xf32> -> vector<128x128xf32>
    %c0_3 = arith.constant 0 : index
    %c0_4 = arith.constant 0 : index
    %3 = vector.load %arg4[%c0_3, %c0_4] : memref<128x32xbf16, #tpu.memory_space<vmem>>, vector<128x32xbf16>
    %c0_5 = arith.constant 0 : index
    %c0_6 = arith.constant 0 : index
    %4 = vector.load %arg2[%c0_5, %c0_6] : memref<32x128xbf16, #tpu.memory_space<vmem>>, vector<32x128xbf16>
    %cst_7 = arith.constant dense<0.000000e+00> : vector<128x128xf32>
    %5 = tpu.matmul %3, %4, %cst_7 {dimension_numbers = #tpu.dot_dimension_numbers<[1], [0], [0], [1], [0, 0, 1, 1], [], []>} : vector<128x32xbf16>, vector<32x128xbf16>, vector<128x128xf32> -> vector<128x128xf32>
    %6 = arith.addf %2, %5 : vector<128x128xf32>
    %c0_8 = arith.constant 0 : index
    %c0_9 = arith.constant 0 : index
    %7 = vector.load %arg5[%c0_8, %c0_9] : memref<128x1xf32, #tpu.memory_space<vmem>>, vector<128x1xf32>
    %8 = vector.broadcast %7 : vector<128x1xf32> to vector<128x128xf32>
    %9 = arith.addf %6, %8 : vector<128x128xf32>
    %cst_10 = arith.constant 0.000000e+00 : f32
    %10 = vector.broadcast %cst_10 : f32 to vector<128x128xf32>
    %11 = arith.maximumf %9, %10 : vector<128x128xf32>
    %c0_11 = arith.constant 0 : index
    %c0_12 = arith.constant 0 : index
    %12 = vector.load %arg6[%c0_11, %c0_12] : memref<64x128xbf16, #tpu.memory_space<vmem>>, vector<64x128xbf16>
    %13 = arith.truncf %11 : vector<128x128xf32> to vector<128x128xbf16>
    %cst_13 = arith.constant dense<0.000000e+00> : vector<64x128xf32>
    %14 = tpu.matmul %12, %13, %cst_13 {dimension_numbers = #tpu.dot_dimension_numbers<[1], [0], [0], [1], [0, 0, 1, 1], [], []>} : vector<64x128xbf16>, vector<128x128xbf16>, vector<64x128xf32> -> vector<64x128xf32>
    %c0_14 = arith.constant 0 : index
    %c0_15 = arith.constant 0 : index
    %15 = vector.load %arg7[%c0_14, %c0_15] : memref<64x1xf32, #tpu.memory_space<vmem>>, vector<64x1xf32>
    %16 = vector.broadcast %15 : vector<64x1xf32> to vector<64x128xf32>
    %17 = arith.addf %14, %16 : vector<64x128xf32>
    %cst_16 = arith.constant 0.000000e+00 : f32
    %18 = vector.broadcast %cst_16 : f32 to vector<64x128xf32>
    %19 = arith.maximumf %17, %18 : vector<64x128xf32>
    %c0_17 = arith.constant 0 : index
    %c0_18 = arith.constant 0 : index
    %20 = vector.load %arg8[%c0_17, %c0_18] : memref<64x1xf32, #tpu.memory_space<vmem>>, vector<64x1xf32>
    %21 = vector.broadcast %20 : vector<64x1xf32> to vector<64x128xf32>
    %22 = arith.mulf %19, %21 : vector<64x128xf32>
    %cst_19 = arith.constant dense<0.000000e+00> : vector<128xf32>
    %23 = vector.multi_reduction <add>, %22, %cst_19 [0] : vector<64x128xf32> to vector<128xf32>
    %24 = vector.shape_cast %23 : vector<128xf32> to vector<1x128xf32>
    %c0_20 = arith.constant 0 : index
    %c0_21 = arith.constant 0 : index
    %25 = memref.load %arg9[%c0_20, %c0_21] : memref<1x1xf32, #tpu.memory_space<smem>>
    %26 = vector.broadcast %25 : f32 to vector<1x128xf32>
    %27 = arith.addf %24, %26 : vector<1x128xf32>
    %c0_22 = arith.constant 0 : index
    %c0_23 = arith.constant 0 : index
    %28 = vector.load %arg10[%c0_22, %c0_23] : memref<1x128xf32, #tpu.memory_space<vmem>>, vector<1x128xf32>
    tpu.vector_store %arg10[%c0_22, %c0_23], %27 {strides = array<i32>} : memref<1x128xf32, #tpu.memory_space<vmem>>, vector<1x128xf32>,
    return
  }
  func.func @transform_0(%arg0: i32) -> (i32, i32) {
    %c0_i32 = arith.constant 0 : i32
    %c0_i32_0 = arith.constant 0 : i32
    return %c0_i32, %arg0 : i32, i32
  }
  func.func @transform_1(%arg0: i32) -> (i32, i32) {
    %c0_i32 = arith.constant 0 : i32
    %c0_i32_0 = arith.constant 0 : i32
    return %c0_i32, %arg0 : i32, i32
  }
  func.func @transform_2(%arg0: i32) -> (i32, i32) {
    %c0_i32 = arith.constant 0 : i32
    %c0_i32_0 = arith.constant 0 : i32
    %c0_i32_1 = arith.constant 0 : i32
    return %c0_i32, %c0_i32_0 : i32, i32
  }
  func.func @transform_3(%arg0: i32) -> (i32, i32) {
    %c0_i32 = arith.constant 0 : i32
    %c0_i32_0 = arith.constant 0 : i32
    %c0_i32_1 = arith.constant 0 : i32
    return %c0_i32, %c0_i32_0 : i32, i32
  }
  func.func @transform_4(%arg0: i32) -> (i32, i32) {
    %c0_i32 = arith.constant 0 : i32
    %c0_i32_0 = arith.constant 0 : i32
    %c0_i32_1 = arith.constant 0 : i32
    return %c0_i32, %c0_i32_0 : i32, i32
  }
  func.func @transform_5(%arg0: i32) -> (i32, i32) {
    %c0_i32 = arith.constant 0 : i32
    %c0_i32_0 = arith.constant 0 : i32
    %c0_i32_1 = arith.constant 0 : i32
    return %c0_i32, %c0_i32_0 : i32, i32
  }
  func.func @transform_6(%arg0: i32) -> (i32, i32) {
    %c0_i32 = arith.constant 0 : i32
    %c0_i32_0 = arith.constant 0 : i32
    %c0_i32_1 = arith.constant 0 : i32
    return %c0_i32, %c0_i32_0 : i32, i32
  }
  func.func @transform_7(%arg0: i32) -> (i32, i32) {
    %c0_i32 = arith.constant 0 : i32
    %c0_i32_0 = arith.constant 0 : i32
    %c0_i32_1 = arith.constant 0 : i32
    return %c0_i32, %c0_i32_0 : i32, i32
  }
  func.func @transform_8(%arg0: i32) -> (i32, i32) {
    %c0_i32 = arith.constant 0 : i32
    %c0_i32_0 = arith.constant 0 : i32
    %c0_i32_1 = arith.constant 0 : i32
    return %c0_i32, %c0_i32_0 : i32, i32
  }
  func.func @transform_9(%arg0: i32) -> (i32, i32) {
    %c0_i32 = arith.constant 0 : i32
    %c0_i32_0 = arith.constant 0 : i32
    return %c0_i32, %arg0 : i32, i32
  }
}

</mosaic_0001>

<bundles_post_ra>
// kernel: edge_decoder_forward.1
= control target key start
LH: loop header
LB: loop body
LE: loop exit
PB: predicated region body
PF: predicated region fallthrough
CT: control target
= control target key end

     0   :  { %15 = vsyncpa [#allocation4], 0  ;;  %s1307_s0 = inlined_call_operand.vmem [shape: bf16[32,128], index: 0, kind: input, shape index: {}]   ;;  %s1308_s1 = inlined_call_operand.vmem [shape: bf16[32,128], index: 1, kind: input, shape index: {}]   ;;  %s1309_s2 = inlined_call_operand.vmem [shape: bf16[128,32], index: 2, kind: input, shape index: {}]   ;;  %s1310_s3 = inlined_call_operand.vmem [shape: bf16[128,32], index: 3, kind: input, shape index: {}]   ;;  %s1311_s4 = inlined_call_operand.vmem [shape: f32[128,1], index: 4, kind: input, shape index: {}]   ;;  %s1312_s5 = inlined_call_operand.hbm [shape: bf16[64,128], index: 5, kind: input, shape index: {}]   ;;  %s1313_s6 = inlined_call_operand.hbm [shape: f32[64,1], index: 6, kind: input, shape index: {}]   ;;  %s1314_s7 = inlined_call_operand.hbm [shape: f32[64,1], index: 7, kind: input, shape index: {}]   ;;  %s1315_s8 = inlined_call_operand.<no memory space> [shape: f32[1,1], index: 8, kind: input, shape index: {}]   ;;  %s1316_s9 = inlined_call_operand.vmem [shape: f32[1,128], index: 9, kind: output, shape index: {}]  }
   0x1   :  { %16 = vsyncpa [#allocation6], 0  ;;  %s1080_s30 = smov [#allocation5]  }
   0x2   :  { %s44_s10 = sshll.u32 %s1080_s30, 4  ;;  %s45_s10 = int_to_ptr.vmem [resolvable:$true] %s44_s10 }
   0x3   :  { %s1024_s11 = scalar_lea.vmem %s45_s10, 1024  ;;  %p1029_p1 = scmp.lt.s32.totalorder %s45_s10, %s45_s10 }
   0x4   :  { %p1025_p0 = scmp.ne.s32.totalorder %s45_s10, %s1024_s11  ;;  %p1030_p2 = scmp.lt.s32.totalorder %s1024_s11, %s1024_s11 }
   0x6   :  { %p1031_p3 = por %p1030_p2, %p1029_p1 }
   0x8   :  { %p1032_p4 = pnand %p1031_p3, %p1025_p0 }
   0xa   :  { %1035 = shalt.err (!%p1032_p4)
}
   0xb   :  { %s1081_s12 = smov 128   ;;  %s1082_s13 = smov 8  }
   0xc   :  { %50 = dma.hbm_to_vmem [thread:$0]  %s1313_s6, 1024, %s45_s10, [#allocation6], %s1081_s12, %s1081_s12, %s1082_s13  }
   0xd   :  { %s1083_s16 = smov [#allocation3]  }
   0xe   :  { %s32_s17 = sshll.u32 %s1083_s16, 4  ;;  %s33_s17 = int_to_ptr.vmem [resolvable:$true] %s32_s17 }
   0xf   :  { %s1044_s18 = scalar_lea.vmem %s33_s17, 512  ;;  %p1049_p6 = scmp.lt.s32.totalorder %s33_s17, %s33_s17 }
  0x10   :  { %p1045_p5 = scmp.ne.s32.totalorder %s33_s17, %s1044_s18  ;;  %p1050_p7 = scmp.lt.s32.totalorder %s1044_s18, %s1044_s18 }
  0x12   :  { %p1051_p8 = por %p1050_p7, %p1049_p6 }
  0x14   :  { %p1052_p9 = pnand %p1051_p8, %p1045_p5 }
  0x16   :  { %1055 = shalt.err (!%p1052_p9)
}
  0x17   :  { %s1084_s19 = smov 64   ;;  %s1085_s20 = smov 4  }
  0x18   :  { %38 = dma.hbm_to_vmem [thread:$0]  %s1312_s5, 512, %s33_s17, [#allocation4], %s1084_s19, %s1084_s19, %s1085_s20  }
  0x19   :  { %s1086_s23 = smov [#allocation7]  }
  0x1a   :  { %s56_s24 = sshll.u32 %s1086_s23, 4  ;;  %s57_s24 = int_to_ptr.vmem [resolvable:$true] %s56_s24 }
  0x1b   :  { %s1064_s6 = scalar_lea.vmem %s57_s24, 1024  ;;  %p1069_p11 = scmp.lt.s32.totalorder %s57_s24, %s57_s24 }
  0x1c   :  { %p1065_p10 = scmp.ne.s32.totalorder %s57_s24, %s1064_s6  ;;  %p1070_p12 = scmp.lt.s32.totalorder %s1064_s6, %s1064_s6 }
  0x1e   :  { %p1071_p13 = por %p1070_p12, %p1069_p11 }
  0x20   :  { %p1072_p0 = pnand %p1071_p13, %p1065_p10 }
  0x22   :  { %1075 = shalt.err (!%p1072_p0)
}
  0x23   :  { %62 = dma.hbm_to_vmem [thread:$0]  %s1314_s7, 1024, %s57_s24, [#allocation6], %s1081_s12, %s1081_s12, %s1082_s13  }
  0x24   :  { %1076 = dma.done.wait [#allocation4], 512  }
  0x25   :  { %1077 = vsyncadd [#allocation4], 4294966784 }
  0x26   :  { %1078 = dma.done.wait [#allocation6], 2048  }
  0x27   :  { %1079 = vsyncadd [#allocation6], 4294965248  ;;  %v1087_v0 = vmov 0   ;;  %v992_v1 = vld [vmem:[%s1308_s1 + $0x8] sm:$0xff]   ;;  %v994_v3 = vld [vmem:[%s1308_s1] sm:$0xff]   ;;  %vm167_vm0 = vcmask 261120  }
  0x28   :  { %990 = vset.pattern.permute.xlu0 %v1087_v0  ;;  %991 = vset.pattern.permute.xlu1 %v1087_v0  ;;  %v993_v2 = vld [vmem:[%s1307_s0 + $0x8] sm:$0xff]   ;;  %v995_v4 = vld [vmem:[%s1307_s0] sm:$0xff]   ;;  %v1000_v9 = vld [vmem:[%s1310_s3 + $0x10] sm:$0xff]  }
  0x29   :  { %902 = vmatprep.subr.bf16.mxu0 %v992_v1  ;;  %922 = vmatprep.subr.bf16.mxu1 %v993_v2  ;;  %v996_v5 = vld [vmem:[%s1310_s3] sm:$0xff]   ;;  %v998_v7 = vld [vmem:[%s1310_s3 + $0x8] sm:$0xff]   ;;  %v1001_v10 = vld [vmem:[%s1309_s2 + $0x10] sm:$0xff]  }
  0x2a   :  { %903 = vmatpush3.bf16.msra.mxu0 %v992_v1  ;;  %923 = vmatpush3.bf16.msra.mxu1 %v993_v2  ;;  %v997_v6 = vld [vmem:[%s1309_s2] sm:$0xff]   ;;  %v999_v8 = vld [vmem:[%s1309_s2 + $0x8] sm:$0xff]   ;;  %v1002_v11 = vld [vmem:[%s1310_s3 + $0x18] sm:$0xff]  }
  0x2b   :  { %904 = vmatprep.subr.bf16.mxu0 %v994_v3  ;;  %924 = vmatprep.subr.bf16.mxu1 %v995_v4  ;;  %v1003_v12 = vld [vmem:[%s1309_s2 + $0x18] sm:$0xff]   ;;  %v1004_v13 = vld [vmem:[%s1310_s3 + $0x20] sm:$0xff]   ;;  %v476_v15 = vld [vmem:[%s1311_s4 + $0x70] sm:$0xff] }
  0x2c   :  { %906 = vmatprep.mubr.msk.bf16.mxu0 %vm167_vm0, %v996_v5  ;;  %926 = vmatprep.mubr.msk.bf16.mxu1 %vm167_vm0, %v997_v6  ;;  %v1005_v14 = vld [vmem:[%s1309_s2 + $0x20] sm:$0xff]   ;;  %v1006_v17 = vld [vmem:[%s1310_s3 + $0x28] sm:$0xff]   ;;  %v477_v18 = vld [vmem:[%s1311_s4 + $0x78] sm:$0xff] }
  0x2d   :  { %v474_v16 = vld [vmem:[%s1311_s4 + $0x60] sm:$0xff]  ;;  %550 = vperm.xlu0 %990, %v476_v15   ;;  %v475_v19 = vld [vmem:[%s1311_s4 + $0x68] sm:$0xff]  ;;  %v1008_v21 = vld [vmem:[%s1310_s3 + $0x30] sm:$0xff]  }
  0x2e   :  { %905 = vmatpush3.bf16.msra.mxu0 %v994_v3  ;;  %925 = vmatpush3.bf16.msra.mxu1 %v995_v4  ;;  %v1007_v20 = vld [vmem:[%s1309_s2 + $0x28] sm:$0xff]   ;;  %v1009_v22 = vld [vmem:[%s1309_s2 + $0x30] sm:$0xff]   ;;  %v473_v24 = vld [vmem:[%s1311_s4 + $0x58] sm:$0xff] }
  0x2f   :  { %540 = vperm.xlu1 %991, %v474_v16   ;;  %v472_v23 = vld [vmem:[%s1311_s4 + $0x50] sm:$0xff]  ;;  %v1010_v25 = vld [vmem:[%s1310_s3 + $0x38] sm:$0xff]   ;;  %v470_v27 = vld [vmem:[%s1311_s4 + $0x40] sm:$0xff] }
  0x30   :  { %v1011_v26 = vld [vmem:[%s1309_s2 + $0x38] sm:$0xff]   ;;  %v471_v28 = vld [vmem:[%s1311_s4 + $0x48] sm:$0xff]  ;;  %v468_v29 = vld [vmem:[%s1311_s4 + $0x30] sm:$0xff] }
  0x31   :  { %907 = vmatmul.mubr.msk.bf16.vlgmr.msra.gmra.mxu0 %vm167_vm0, %v998_v7  ;;  %927 = vmatmul.mubr.msk.bf16.vlgmr.msra.gmra.mxu1 %vm167_vm0, %v999_v8  ;;  %v469_v30 = vld [vmem:[%s1311_s4 + $0x38] sm:$0xff]  ;;  %v466_v31 = vld [vmem:[%s1311_s4 + $0x20] sm:$0xff]  ;;  %v467_v32 = vld [vmem:[%s1311_s4 + $0x28] sm:$0xff] }
  0x32   :  { %910 = vmatprep.mubr.msk.bf16.mxu0 %vm167_vm0, %v1000_v9  ;;  %930 = vmatprep.mubr.msk.bf16.mxu1 %vm167_vm0, %v1001_v10  ;;  %v464_v33 = vld [vmem:[%s1311_s4 + $0x10] sm:$0xff]  ;;  %v465_v34 = vld [vmem:[%s1311_s4 + $0x18] sm:$0xff]  ;;  %v462_v35 = vld [vmem:[%s1311_s4] sm:$0xff] }
  0x33   :  { %555 = vperm.xlu0 %990, %v477_v18   ;;  %545 = vperm.xlu1 %991, %v475_v19   ;;  %v463_v36 = vld [vmem:[%s1311_s4 + $0x8] sm:$0xff]  ;;  %v606_v37 = vld [vmem:[#allocation5] sm:$0xff]  ;;  %v608_v39 = vld [vmem:[#allocation5 + $0x10] sm:$0xff] }
  0x34   :  { %v607_v38 = vld [vmem:[#allocation5 + $0x8] sm:$0xff]  ;;  %v609_v40 = vld [vmem:[#allocation5 + $0x18] sm:$0xff]  ;;  %v751_v41 = vld [vmem:[#allocation7] sm:$0xff] }
  0x35   :  { %v752_v42 = vld [vmem:[#allocation7 + $0x8] sm:$0xff]  ;;  %v610_v43 = vld [vmem:[#allocation5 + $0x20] sm:$0xff]  ;;  %v753_v44 = vld [vmem:[#allocation7 + $0x10] sm:$0xff] }
  0x36   :  { %v611_v45 = vld [vmem:[#allocation5 + $0x28] sm:$0xff]  ;;  %v754_v46 = vld [vmem:[#allocation7 + $0x18] sm:$0xff]  ;;  %v612_v47 = vld [vmem:[#allocation5 + $0x30] sm:$0xff] }
  0x37   :  { %530 = vperm.xlu0 %990, %v472_v23   ;;  %535 = vperm.xlu1 %991, %v473_v24   ;;  %v755_v48 = vld [vmem:[#allocation7 + $0x20] sm:$0xff]  ;;  %v613_v49 = vld [vmem:[#allocation5 + $0x38] sm:$0xff]  ;;  %v756_v50 = vld [vmem:[#allocation7 + $0x28] sm:$0xff] }
  0x38   :  { %v757_v51 = vld [vmem:[#allocation7 + $0x30] sm:$0xff]  ;;  %v758_v52 = vld [vmem:[#allocation7 + $0x38] sm:$0xff]  ;;  %v1012_v53 = vld [vmem:[#allocation3] sm:$0xff]  }
  0x39   :  { %911 = vmatmul.mubr.msk.bf16.gmra.mxu0 %vm167_vm0, %v1002_v11  ;;  %931 = vmatmul.mubr.msk.bf16.gmra.mxu1 %vm167_vm0, %v1003_v12  ;;  %v1013_v54 = vld [vmem:[#allocation3 + $0x10] sm:$0xff]  }
  0x3a   :  { %914 = vmatprep.mubr.msk.bf16.mxu0 %vm167_vm0, %v1004_v13  ;;  %934 = vmatprep.mubr.msk.bf16.mxu1 %vm167_vm0, %v1005_v14 }
  0x3b   :  { %520 = vperm.xlu0 %990, %v470_v27   ;;  %525 = vperm.xlu1 %991, %v471_v28  }
  0x3f   :  { %510 = vperm.xlu0 %990, %v468_v29   ;;  %515 = vperm.xlu1 %991, %v469_v30  }
  0x41   :  { %915 = vmatmul.mubr.msk.bf16.gmra.mxu0 %vm167_vm0, %v1006_v17  ;;  %935 = vmatmul.mubr.msk.bf16.gmra.mxu1 %vm167_vm0, %v1007_v20 }
  0x42   :  { %918 = vmatprep.mubr.msk.bf16.mxu0 %vm167_vm0, %v1008_v21  ;;  %938 = vmatprep.mubr.msk.bf16.mxu1 %vm167_vm0, %v1009_v22 }
  0x43   :  { %500 = vperm.xlu0 %990, %v466_v31   ;;  %505 = vperm.xlu1 %991, %v467_v32  }
  0x47   :  { %490 = vperm.xlu0 %990, %v464_v33   ;;  %495 = vperm.xlu1 %991, %v465_v34  }
  0x49   :  { %919 = vmatmul.mubr.msk.bf16.gmra.mxu0 %vm167_vm0, %v1010_v25  ;;  %939 = vmatmul.mubr.msk.bf16.gmra.mxu1 %vm167_vm0, %v1011_v26 }
  0x4a   :  { %958 = vmatprep.mubr.bf16.mxu0 %v1012_v53  ;;  %962 = vmatprep.mubr.bf16.mxu1 %v1013_v54 }
  0x4b   :  { %480 = vperm.xlu0 %990, %v462_v35   ;;  %485 = vperm.xlu1 %991, %v463_v36  }
  0x4f   :  { %616 = vperm.xlu0 %990, %v606_v37   ;;  %621 = vperm.xlu1 %991, %v607_v38  }
  0x53   :  { %626 = vperm.xlu0 %990, %v608_v39   ;;  %631 = vperm.xlu1 %991, %v609_v40  }
  0x57   :  { %761 = vperm.xlu0 %990, %v751_v41   ;;  %766 = vperm.xlu1 %991, %v752_v42  }
  0x5b   :  { %636 = vperm.xlu0 %990, %v610_v43   ;;  %771 = vperm.xlu1 %991, %v753_v44  }
  0x5f   :  { %641 = vperm.xlu0 %990, %v611_v45   ;;  %776 = vperm.xlu1 %991, %v754_v46  }
  0x63   :  { %646 = vperm.xlu0 %990, %v612_v47   ;;  %781 = vperm.xlu1 %991, %v755_v48  }
  0x67   :  { %651 = vperm.xlu0 %990, %v613_v49   ;;  %786 = vperm.xlu1 %991, %v756_v50  }
  0x6b   :  { %791 = vperm.xlu0 %990, %v757_v51   ;;  %796 = vperm.xlu1 %991, %v758_v52  }
  0xa8   :  { %v551_v5 = vpop.permute.xlu0 %550 }
  0xaa   :  { %v541_v2 = vpop.permute.xlu1 %540 }
  0xae   :  { %v546_v10 = vpop.permute.xlu1 %545  ;;  %v556_v13 = vpop.permute.xlu0 %555 }
  0xb2   :  { %v536_v18 = vpop.permute.xlu1 %535  ;;  %v531_v21 = vpop.permute.xlu0 %530 }
  0xb6   :  { %v526_v28 = vpop.permute.xlu1 %525  ;;  %v521_v34 = vpop.permute.xlu0 %520 }
  0xba   :  { %v516_v45 = vpop.permute.xlu1 %515  ;;  %v511_v51 = vpop.permute.xlu0 %510 }
  0xf1   :  { %v1271_v55 = vpop.f32.mrf.mxu0  ;;  %v1273_v56 = vpop.f32.mrf.mxu1 }
  0xf3   :  { %v1275_v57 = vpop.f32.mrf.mxu0  ;;  %v1277_v58 = vpop.f32.mrf.mxu1 }
  0xf5   :  { %v1279_v59 = vpop.f32.mrf.mxu0  ;;  %v1281_v60 = vpop.f32.mrf.mxu1 }
  0xf7   :  { %v1283_v61 = vpop.f32.mrf.mxu0  ;;  %v1285_v62 = vpop.f32.mrf.mxu1 }
  0xf9   :  { %v912_v63 = vpop.f32.mrf.mxu0  ;;  %v932_v0 = vpop.f32.mrf.mxu1 }
  0xfb   :  { %v1287_v1 = vpop.f32.mrf.mxu0  ;;  %v1289_v3 = vpop.f32.mrf.mxu1 }
  0xfd   :  { %v913_v4 = vpop.f32.mrf.mxu0  ;;  %v933_v6 = vpop.f32.mrf.mxu1 }
  0xfe   :  { %v427_v52 = vadd.f32 %v933_v6, %v913_v4  ;;  %v416_v6 = vadd.f32 %v1289_v3, %v1287_v1 }
  0xff   :  { %v245_v7 = vpop.f32.mrf.mxu0  ;;  %v418_v8 = vpop.f32.mrf.mxu1 }
 0x101   :  { %v916_v9 = vpop.f32.mrf.mxu0  ;;  %v936_v11 = vpop.f32.mrf.mxu1 }
 0x102   :  { %v440_v35 = vadd.f32 %v936_v11, %v916_v9 }
 0x103   :  { %v258_v12 = vpop.f32.mrf.mxu0  ;;  %v431_v14 = vpop.f32.mrf.mxu1 }
 0x104   :  { %v568_v46 = vadd.f32 %v531_v21, %v440_v35  ;;  %v432_v47 = vadd.f32 %v431_v14, %v258_v12  ;;  %v419_v12 = vadd.f32 %v418_v8, %v245_v7  ;;  %v408_v7 = vadd.f32 %v1273_v56, %v1271_v55 }
 0x105   :  { %v917_v15 = vpop.f32.mrf.mxu0  ;;  %v937_v16 = vpop.f32.mrf.mxu1 }
 0x106   :  { %v443_v29 = vadd.f32 %v937_v16, %v917_v15  ;;  %v584_v9 = vmax.f32 %v568_v46, 0.0  ;;  %v566_v11 = vadd.f32 %v521_v34, %v432_v47  ;;  %v501_v16 = vpop.permute.xlu0 %500 }
 0x107   :  { %v261_v17 = vpop.f32.mrf.mxu0  ;;  %v434_v19 = vpop.f32.mrf.mxu1  ;;  %v562_v21 = vadd.f32 %v501_v16, %v416_v6 }
 0x108   :  { %v569_v40 = vadd.f32 %v536_v18, %v443_v29  ;;  %v435_v41 = vadd.f32 %v434_v19, %v261_v17  ;;  %v582_v17 = vmax.f32 %v566_v11, 0.0 }
 0x109   :  { %v920_v20 = vpop.f32.mrf.mxu0  ;;  %v940_v22 = vpop.f32.mrf.mxu1 }
 0x10a   :  { %v456_v23 = vadd.f32 %v940_v22, %v920_v20  ;;  %v585_v53 = vmax.f32 %v569_v40, 0.0  ;;  %v567_v54 = vadd.f32 %v526_v28, %v435_v41  ;;  %v491_v1 = vpop.permute.xlu0 %490  ;;  %v403_v22 = vadd.f32 %v1285_v62, %v1283_v61 }
 0x10b   :  { %v274_v24 = vpop.f32.mrf.mxu0  ;;  %v447_v25 = vpop.f32.mrf.mxu1 }
 0x10c   :  { %v448_v26 = vadd.f32 %v447_v25, %v274_v24  ;;  %v572_v31 = vadd.f32 %v551_v5, %v456_v23  ;;  %v603_v14 = vpack.c.bf16 %v585_v53, %v584_v9  ;;  %v583_v15 = vmax.f32 %v567_v54, 0.0 }
 0x10d   :  { %v921_v27 = vpop.f32.mrf.mxu0  ;;  %v941_v30 = vpop.f32.mrf.mxu1  ;;  %v400_v24 = vadd.f32 %v1277_v58, %v1275_v57  ;;  %v578_v25 = vmax.f32 %v562_v21, 0.0  ;;  %v1014_v58 = vld [vmem:[#allocation3 + $0x8] sm:$0xff]  }
 0x10e   :  { %v459_v32 = vadd.f32 %v941_v30, %v921_v27  ;;  %v570_v37 = vadd.f32 %v541_v2, %v448_v26  ;;  %v588_v42 = vmax.f32 %v572_v31, 0.0  ;;  %v424_v2 = vadd.f32 %v932_v0, %v912_v63  ;;  %v481_v28 = vpop.permute.xlu0 %480 }
 0x10f   :  { %v277_v33 = vpop.f32.mrf.mxu0  ;;  %v450_v36 = vpop.f32.mrf.mxu1  ;;  %v411_v63 = vadd.f32 %v1281_v60, %v1279_v59  ;;  %v602_v19 = vpack.c.bf16 %v583_v15, %v582_v17  ;;  %v560_v60 = vadd.f32 %v491_v1, %v408_v7  ;;  %v558_v61 = vadd.f32 %v481_v28, %v400_v24 }
 0x110   :  { %v573_v38 = vadd.f32 %v556_v13, %v459_v32  ;;  %v451_v39 = vadd.f32 %v450_v36, %v277_v33  ;;  %v586_v48 = vmax.f32 %v570_v37, 0.0  ;;  %v565_v13 = vadd.f32 %v516_v45, %v427_v52  ;;  %v1015_v32 = vld [vmem:[#allocation3 + $0x18] sm:$0xff]  }
 0x111   :  { %v564_v4 = vadd.f32 %v511_v51, %v424_v2  ;;  %v576_v29 = vmax.f32 %v560_v60, 0.0  ;;  %v574_v31 = vmax.f32 %v558_v61, 0.0 }
 0x112   :  { %v589_v43 = vmax.f32 %v573_v38, 0.0  ;;  %v571_v44 = vadd.f32 %v546_v10, %v451_v39  ;;  %v506_v10 = vpop.permute.xlu1 %505  ;;  %v581_v0 = vmax.f32 %v565_v13, 0.0  ;;  %v617_v33 = vpop.permute.xlu0 %616 }
 0x113   :  { %v563_v18 = vadd.f32 %v506_v10, %v419_v12  ;;  %v580_v8 = vmax.f32 %v564_v4, 0.0 }
 0x114   :  { %v605_v49 = vpack.c.bf16 %v589_v43, %v588_v42  ;;  %v587_v50 = vmax.f32 %v571_v44, 0.0 }
 0x115   :  { %v601_v23 = vpack.c.bf16 %v581_v0, %v580_v8  ;;  %v579_v59 = vmax.f32 %v563_v18, 0.0 }
 0x116   :  { %v604_v5 = vpack.c.bf16 %v587_v50, %v586_v48  ;;  %942 = vmatprep.subr.bf16.mxu0 %v605_v49  ;;  %966 = vmatprep.subr.bf16.mxu1 %v605_v49  ;;  %v496_v20 = vpop.permute.xlu1 %495  ;;  %v627_v35 = vpop.permute.xlu0 %626 }
 0x117   :  { %943 = vmatpush3.bf16.msra.mxu0 %v605_v49  ;;  %974 = vmatpush3.bf16.msra.mxu1 %v605_v49  ;;  %v561_v3 = vadd.f32 %v496_v20, %v411_v63  ;;  %v600_v27 = vpack.c.bf16 %v579_v59, %v578_v25 }
 0x118   :  { %944 = vmatprep.subr.bf16.mxu0 %v604_v5  ;;  %967 = vmatprep.subr.bf16.mxu1 %v604_v5 }
 0x119   :  { %v577_v56 = vmax.f32 %v561_v3, 0.0 }
 0x11a   :  { %v486_v55 = vpop.permute.xlu1 %485  ;;  %v762_v37 = vpop.permute.xlu0 %761 }
 0x11b   :  { %945 = vmatpush3.bf16.msra.mxu0 %v604_v5  ;;  %975 = vmatpush3.bf16.msra.mxu1 %v604_v5  ;;  %v559_v26 = vadd.f32 %v486_v55, %v403_v22  ;;  %v599_v62 = vpack.c.bf16 %v577_v56, %v576_v29 }
 0x11c   :  { %946 = vmatprep.subr.bf16.mxu0 %v603_v14  ;;  %968 = vmatprep.subr.bf16.mxu1 %v603_v14 }
 0x11d   :  { %v575_v30 = vmax.f32 %v559_v26, 0.0 }
 0x11e   :  { %v622_v34 = vpop.permute.xlu1 %621  ;;  %v637_v39 = vpop.permute.xlu0 %636 }
 0x11f   :  { %947 = vmatpush3.bf16.msra.mxu0 %v603_v14  ;;  %976 = vmatpush3.bf16.msra.mxu1 %v603_v14  ;;  %v598_v57 = vpack.c.bf16 %v575_v30, %v574_v31  ;;  %v821_v31 = vstv %s1315_s8 }
 0x120   :  { %948 = vmatprep.subr.bf16.mxu0 %v602_v19  ;;  %969 = vmatprep.subr.bf16.mxu1 %v602_v19 }
 0x122   :  { %v632_v36 = vpop.permute.xlu1 %631  ;;  %v642_v43 = vpop.permute.xlu0 %641 }
 0x123   :  { %949 = vmatpush3.bf16.msra.mxu0 %v602_v19  ;;  %977 = vmatpush3.bf16.msra.mxu1 %v602_v19 }
 0x124   :  { %950 = vmatprep.subr.bf16.mxu0 %v601_v23  ;;  %970 = vmatprep.subr.bf16.mxu1 %v601_v23 }
 0x126   :  { %v767_v38 = vpop.permute.xlu1 %766  ;;  %v647_v5 = vpop.permute.xlu0 %646 }
 0x127   :  { %951 = vmatpush3.bf16.msra.mxu0 %v601_v23  ;;  %978 = vmatpush3.bf16.msra.mxu1 %v601_v23 }
 0x128   :  { %952 = vmatprep.subr.bf16.mxu0 %v600_v27  ;;  %971 = vmatprep.subr.bf16.mxu1 %v600_v27 }
 0x12a   :  { %v772_v40 = vpop.permute.xlu1 %771  ;;  %v652_v0 = vpop.permute.xlu0 %651 }
 0x12b   :  { %953 = vmatpush3.bf16.msra.mxu0 %v600_v27  ;;  %979 = vmatpush3.bf16.msra.mxu1 %v600_v27 }
 0x12c   :  { %954 = vmatprep.subr.bf16.mxu0 %v599_v62  ;;  %972 = vmatprep.subr.bf16.mxu1 %v599_v62 }
 0x12e   :  { %v777_v46 = vpop.permute.xlu1 %776  ;;  %v792_v60 = vpop.permute.xlu0 %791 }
 0x12f   :  { %955 = vmatpush3.bf16.msra.mxu0 %v599_v62  ;;  %980 = vmatpush3.bf16.msra.mxu1 %v599_v62 }
 0x130   :  { %956 = vmatprep.subr.bf16.mxu0 %v598_v57  ;;  %973 = vmatprep.subr.bf16.mxu1 %v598_v57 }
 0x132   :  { %v782_v13 = vpop.permute.xlu1 %781 }
 0x133   :  { %957 = vmatpush3.bf16.msra.mxu0 %v598_v57  ;;  %981 = vmatpush3.bf16.msra.mxu1 %v598_v57 }
 0x136   :  { %959 = vmatmul.mubr.bf16.vlgmr.msra.gmra.mxu0 %v1014_v58  ;;  %963 = vmatmul.mubr.bf16.vlgmr.msra.gmra.mxu1 %v1015_v32  ;;  %v787_v8 = vpop.permute.xlu1 %786 }
 0x13a   :  { %v797_v55 = vpop.permute.xlu1 %796 }
 0x1f6   :  { %v960_v41 = vpop.f32.mrf.mxu0  ;;  %v964_v42 = vpop.f32.mrf.mxu1 }
 0x1f7   :  { %v721_v50 = vadd.f32 %v960_v41, %v627_v35  ;;  %v737_v6 = vadd.f32 %v964_v42, %v647_v5 }
 0x1f8   :  { %v712_v44 = vpop.f32.mrf.mxu0  ;;  %v728_v45 = vpop.f32.mrf.mxu1 }
 0x1f9   :  { %v713_v47 = vadd.f32 %v712_v44, %v617_v33  ;;  %v745_v9 = vmax.f32 %v721_v50, 0.0  ;;  %v729_v11 = vadd.f32 %v728_v45, %v637_v39  ;;  %v749_v21 = vmax.f32 %v737_v6, 0.0 }
 0x1fa   :  { %v961_v48 = vpop.f32.mrf.mxu0  ;;  %v965_v49 = vpop.f32.mrf.mxu1 }
 0x1fb   :  { %v743_v52 = vmax.f32 %v713_v47, 0.0  ;;  %v724_v53 = vadd.f32 %v961_v48, %v632_v36  ;;  %v801_v4 = vmul.f32 %v772_v40, %v745_v9  ;;  %v747_v17 = vmax.f32 %v729_v11, 0.0 }
 0x1fc   :  { %v715_v51 = vpop.f32.mrf.mxu0  ;;  %v731_v2 = vpop.f32.mrf.mxu1  ;;  %v740_v19 = vadd.f32 %v965_v49, %v652_v0  ;;  %v805_v24 = vmul.f32 %v792_v60, %v749_v21 }
 0x1fd   :  { %v716_v54 = vadd.f32 %v715_v51, %v622_v34  ;;  %v799_v12 = vmul.f32 %v762_v37, %v743_v52  ;;  %v746_v14 = vmax.f32 %v724_v53, 0.0  ;;  %v732_v16 = vadd.f32 %v731_v2, %v642_v43 }
 0x1fe   :  { %v803_v1 = vmul.f32 %v782_v13, %v747_v17  ;;  %v750_v22 = vmax.f32 %v740_v19, 0.0 }
 0x1ff   :  { %v744_v10 = vmax.f32 %v716_v54, 0.0  ;;  %v802_v18 = vmul.f32 %v777_v46, %v746_v14  ;;  %v748_v7 = vmax.f32 %v732_v16, 0.0 }
 0x200   :  { %v806_v56 = vmul.f32 %v797_v55, %v750_v22 }
 0x201   :  { %v800_v15 = vmul.f32 %v767_v38, %v744_v10  ;;  %v804_v23 = vmul.f32 %v787_v8, %v748_v7 }
 0x203   :  { %v807_v63 = vadd.f32 %v800_v15, %v799_v12 }
 0x205   :  { %v808_v20 = vadd.f32 %v807_v63, %v801_v4 }
 0x207   :  { %v809_v3 = vadd.f32 %v808_v20, %v802_v18 }
 0x209   :  { %v810_v59 = vadd.f32 %v809_v3, %v803_v1 }
 0x20b   :  { %v811_v25 = vadd.f32 %v810_v59, %v804_v23 }
 0x20d   :  { %v812_v26 = vadd.f32 %v811_v25, %v805_v24 }
 0x20f   :  { %v813_v27 = vadd.f32 %v812_v26, %v806_v56 }
 0x211   :  { %v814_v28 = vrot.slane %v813_v27, 4 }
 0x213   :  { %v815_v29 = vadd.f32 %v814_v28, %v813_v27 }
 0x215   :  { %v816_v61 = vrot.slane %v815_v29, 2 }
 0x217   :  { %v817_v62 = vadd.f32 %v816_v61, %v815_v29 }
 0x219   :  { %v818_v30 = vrot.slane %v817_v62, 1 }
 0x21b   :  { %v819_v57 = vadd.f32 %v818_v30, %v817_v62 }
 0x21d   :  { %v822_v58 = vadd.f32 %v821_v31, %v819_v57 }
 0x21f   :  { %823 = vst [vmem:[%s1316_s9] sm:$0x1] %v822_v58 }
 0x220   :  { %828 = vsyncpa [#allocation4], 1 }
 0x221   :  { %829 = vsyncpa [#allocation6], 1 }

</bundles_post_ra>
